<compile_context>
chip_gen: v5e
topology: v5e:2x2
jax: 0.10.0
libtpu: 0.0.40
codegen_flags: <defaults>
</compile_context>

<pallas_src>
import functools
import math

import jax
import jax.numpy as jnp
from jax.experimental import pallas as pl
from jax.experimental.pallas import tpu as pltpu

_F32_BYTES = 4
_TILE_VMEM_BUDGET = 36 * 1024 * 1024   # budget for tiles + pipeline buffers
_VMEM_LIMIT_BYTES = 48 * 1024 * 1024   # scoped-VMEM limit requested from Mosaic
_MAX_TILE_N = 4096                     # diminishing returns past this (mem-bound)
_TINY_PROBLEM_ELEMS = 1 << 16          # N*C*K below this -> plain XLA fast path


def _round_up(x, m):
    return ((x + m - 1) // m) * m


# ----------------------------------------------------------------------------
# Parameter construction (eager init only — mirrors ETFClassifier.__init__)
# ----------------------------------------------------------------------------
def generate_random_orthogonal_matrix(key, feat_in, num_classes):
    rand_mat = jax.random.uniform(key, (feat_in, num_classes), dtype=jnp.float32)
    orth_vec, _ = jnp.linalg.qr(rand_mat)
    # Eager-only sanity check (would raise under jit on a traced value).
    err = float(jnp.max(jnp.abs(orth_vec.T @ orth_vec - jnp.eye(num_classes))))
    assert err < 1e-5, f"QR not orthogonal, max err {err}"
    return orth_vec.astype(jnp.float32)


def make_etf_vec(key, num_classes, in_channels):
    orth_vec = generate_random_orthogonal_matrix(key, in_channels, num_classes)
    i_nc = jnp.eye(num_classes, dtype=jnp.float32)
    one_nc = jnp.full((num_classes, num_classes), 1.0 / num_classes, jnp.float32)
    etf_vec = (orth_vec @ (i_nc - one_nc)) * math.sqrt(num_classes / (num_classes - 1))
    return etf_vec  # (in_channels, num_classes)


def pad_etf_vec_lane_dense(etf_vec):
    """Pre-pad the class dim to a multiple of 128 once at init (lane-dense out)."""
    c, k = etf_vec.shape
    k_pad = _round_up(max(k, 128), 128)
    if k_pad != k:
        etf_vec = jnp.concatenate(
            [etf_vec, jnp.zeros((c, k_pad - k), etf_vec.dtype)], axis=1)
    return etf_vec  # (in_channels, k_pad)


# ----------------------------------------------------------------------------
# Pallas kernel: fused L2-row-normalization + matmul
# ----------------------------------------------------------------------------
def etf_forward_kernel(x_ref, w_ref, o_ref, *, scale_before):
    x = x_ref[...]                                                   # (tile_n, C) f32
    inv_norm = jax.lax.rsqrt(jnp.sum(x * x, axis=1, keepdims=True))  # EUP rsqrt
    # Zero rows -> inf/NaN, matching the PyTorch reference (x / ||x||).
    if scale_before:
        # C <= tile_k: cheaper to scale the MXU LHS (tile_n*C multiplies).
        o_ref[...] = jnp.dot(x * inv_norm, w_ref[...],
                             preferred_element_type=jnp.float32)
    else:
        # C > tile_k: scaling commutes with the matmul; scale the smaller output.
        o_ref[...] = jnp.dot(x, w_ref[...],
                             preferred_element_type=jnp.float32) * inv_norm


# ----------------------------------------------------------------------------
# VMEM-budget-derived tiling
# ----------------------------------------------------------------------------
def _choose_tile_k(c, k_pad):
    """Largest multiple-of-128 divisor of k_pad whose weight tile (incl. its
    pipeline buffers) fits within half the tile budget."""
    m = k_pad // 128
    for d in range(m, 0, -1):
        if m % d:
            continue
        tk = 128 * d
        buffers = 1 if tk == k_pad else 2
        if buffers * c * tk * _F32_BYTES <= _TILE_VMEM_BUDGET // 2:
            return tk
    return 128


def _choose_tile_n(n, c, tile_k, k_pad):
    w_buffers = 1 if tile_k == k_pad else 2
    w_bytes = w_buffers * c * tile_k * _F32_BYTES
    per_row = 2 * _F32_BYTES * (c + tile_k)          # double-buffered x + out rows
    remaining = max(_TILE_VMEM_BUDGET - w_bytes, per_row * 8)
    tile_n_cap = max(8, min(_MAX_TILE_N, (remaining // per_row) // 8 * 8))
    n_tiles = pl.cdiv(n, tile_n_cap)
    if n >= 16:
        # >=2 (even) row steps so v7x's two TensorCores both get work.
        n_tiles = max(2, n_tiles + (n_tiles % 2))
    # Balanced tile bounds the padding waste to < 8 rows per tile.
    tile_n = _round_up(pl.cdiv(n, n_tiles), 8)
    return tile_n, n_tiles


def _etf_pallas(x_padded, etf_vec_padded, tile_n, tile_k):
    n_pad, c = x_padded.shape
    c_w, k_pad = etf_vec_padded.shape
    row_tiles = n_pad // tile_n
    k_tiles = k_pad // tile_k

    if k_tiles == 1:
        # Constant index map -> second pipeline buffer would never be used:
        # keep the resident weight single-buffered to save VMEM.
        w_spec = pl.BlockSpec((c_w, tile_k), lambda i, j: (0, 0),
                              pipeline_mode=pl.Buffered(1))
    else:
        w_spec = pl.BlockSpec((c_w, tile_k), lambda i, j: (0, j))

    kernel = functools.partial(etf_forward_kernel, scale_before=(c <= tile_k))

    return pl.pallas_call(
        kernel,
        out_shape=jax.ShapeDtypeStruct((n_pad, k_pad), jnp.float32),
        grid=(row_tiles, k_tiles),
        in_specs=[
            pl.BlockSpec((tile_n, c), lambda i, j: (i, 0)),   # row tile of x
            w_spec,                                           # weight tile
        ],
        out_specs=pl.BlockSpec((tile_n, tile_k), lambda i, j: (i, j)),
        compiler_params=pltpu.CompilerParams(
            dimension_semantics=("parallel", "parallel"),
            vmem_limit_bytes=_VMEM_LIMIT_BYTES,
        ),
    )(x_padded, etf_vec_padded)


@functools.partial(jax.jit, static_argnames=("num_classes", "force_pallas"))
def etf_classifier_forward(x, etf_vec_padded, num_classes, force_pallas=False):
    """x: (N, C) f32, etf_vec_padded: (C, K_pad) f32 -> (N, num_classes) f32."""
    n, c = x.shape
    c_w, k_pad = etf_vec_padded.shape
    assert c == c_w and k_pad % 128 == 0

    if not force_pallas and n * c * num_classes < _TINY_PROBLEM_ELEMS:
        # pallas_call fixed launch/pipeline overhead dominates at trivial sizes;
        # a single fused XLA op is as fast and avoids the padded writeback.
        x_n = x * jax.lax.rsqrt(jnp.sum(x * x, axis=1, keepdims=True))
        return x_n @ etf_vec_padded[:, :num_classes]

    tile_k = _choose_tile_k(c, k_pad)
    tile_n, n_tiles = _choose_tile_n(n, c, tile_k, k_pad)
    n_pad = tile_n * n_tiles
    if n_pad != n:
        # Pad with ones (not zeros) so padded rows don't produce inf/NaN;
        # they are sliced away below regardless.
        x = jnp.concatenate([x, jnp.ones((n_pad - n, c), x.dtype)], axis=0)

    out_padded = _etf_pallas(x, etf_vec_padded, tile_n, tile_k)
    # Consumers tolerant of the lane padding could skip this slice (it costs an
    # extra HBM->HBM copy); the module contract requires (N, num_classes).
    return out_padded[:n, :num_classes]


# ----------------------------------------------------------------------------
if __name__ == "__main__":
    num_classes = 8
    in_channels = 32
    batch = 8

    key = jax.random.PRNGKey(0)
    k_w, k_x = jax.random.split(key)

    etf_vec = make_etf_vec(k_w, num_classes, in_channels)            # (32, 8)
    etf_vec_padded = pad_etf_vec_lane_dense(etf_vec)                 # (32, 128)
    x = jax.random.normal(k_x, (batch, in_channels), jnp.float32)    # (8, 32)

    # force_pallas=True so the Pallas kernel (not the tiny-problem XLA fast
    # path) is exercised at these small demo shapes.
    out = etf_classifier_forward(x, etf_vec_padded, num_classes, force_pallas=True)
    out = jax.block_until_ready(out)

    # Reference check in plain JAX (matches the PyTorch forward).
    x_n = x / jnp.linalg.norm(x, axis=1, keepdims=True)
    ref = x_n @ etf_vec
    assert out.shape == (batch, num_classes)
    assert float(jnp.max(jnp.abs(out - ref))) < 1e-5, "mismatch vs reference"

    print("KERNEL_OK")
</pallas_src>

<mosaic_0001>
module attributes {stable_mosaic.version = 11 : i64} {
  func.func @etf_forward_kernel(%arg0: i32, %arg1: i32, %arg2: memref<8x32xf32, #tpu.memory_space<vmem>>, %arg3: memref<32x128xf32, #tpu.memory_space<vmem>>, %arg4: memref<8x128xf32, #tpu.memory_space<vmem>>) attributes {dimension_semantics = [#tpu.dimension_semantics<parallel>, #tpu.dimension_semantics<parallel>], iteration_bounds = array<i64: 1, 1>, scalar_prefetch = 0 : i64, scratch_operands = 0 : i64, tpu.core_type = #tpu.core_type<tc>, window_params = [{transform_indices = @transform_0, window_bounds = array<i64: 8, 32>}, {pipeline_mode = #tpu.pipeline_mode<synchronous>, transform_indices = @transform_1, window_bounds = array<i64: 32, 128>}, {transform_indices = @transform_2, window_bounds = array<i64: 8, 128>}]} {
    %c0 = arith.constant 0 : index
    %c0_0 = arith.constant 0 : index
    %0 = vector.load %arg2[%c0, %c0_0] : memref<8x32xf32, #tpu.memory_space<vmem>>, vector<8x32xf32>
    %1 = arith.mulf %0, %0 : vector<8x32xf32>
    %cst = arith.constant dense<0.000000e+00> : vector<8xf32>
    %2 = vector.multi_reduction <add>, %1, %cst [1] : vector<8x32xf32> to vector<8xf32>
    %3 = vector.shape_cast %2 : vector<8xf32> to vector<8x1xf32>
    %4 = math.rsqrt %3 : vector<8x1xf32>
    %5 = vector.broadcast %4 : vector<8x1xf32> to vector<8x32xf32>
    %6 = arith.mulf %0, %5 : vector<8x32xf32>
    %c0_1 = arith.constant 0 : index
    %c0_2 = arith.constant 0 : index
    %7 = vector.load %arg3[%c0_1, %c0_2] : memref<32x128xf32, #tpu.memory_space<vmem>>, vector<32x128xf32>
    %cst_3 = arith.constant dense<0.000000e+00> : vector<8x128xf32>
    %8 = tpu.matmul %6, %7, %cst_3 {dimension_numbers = #tpu.dot_dimension_numbers<[1], [0], [0], [1], [0, 0, 1, 1], [], []>} : vector<8x32xf32>, vector<32x128xf32>, vector<8x128xf32> -> vector<8x128xf32>
    %c0_4 = arith.constant 0 : index
    %c0_5 = arith.constant 0 : index
    %9 = vector.load %arg4[%c0_4, %c0_5] : memref<8x128xf32, #tpu.memory_space<vmem>>, vector<8x128xf32>
    tpu.vector_store %arg4[%c0_4, %c0_5], %8 {strides = array<i32>} : memref<8x128xf32, #tpu.memory_space<vmem>>, vector<8x128xf32>,
    return
  }
  func.func @transform_0(%arg0: i32, %arg1: i32) -> (i32, i32) {
    %c0_i32 = arith.constant 0 : i32
    %c0_i32_0 = arith.constant 0 : i32
    return %arg0, %c0_i32 : i32, i32
  }
  func.func @transform_1(%arg0: i32, %arg1: i32) -> (i32, i32) {
    %c0_i32 = arith.constant 0 : i32
    %c0_i32_0 = arith.constant 0 : i32
    %c0_i32_1 = arith.constant 0 : i32
    return %c0_i32, %c0_i32_0 : i32, i32
  }
  func.func @transform_2(%arg0: i32, %arg1: i32) -> (i32, i32) {
    %c0_i32 = arith.constant 0 : i32
    return %arg0, %arg1 : i32, i32
  }
}

</mosaic_0001>

<bundles_post_ra>
// kernel: etf_classifier_forward.1
= control target key start
LH: loop header
LB: loop body
LE: loop exit
PB: predicated region body
PF: predicated region fallthrough
CT: control target
= control target key end

     0   :  { %7 = vsyncpa [#allocation3], 0  ;;  %s222_s0 = inlined_call_operand.hbm [shape: f32[8,32], index: 0, kind: input, shape index: {}]   ;;  %s223_s1 = inlined_call_operand.hbm [shape: f32[32,128], index: 1, kind: input, shape index: {}]   ;;  %s224_s2 = inlined_call_operand.hbm [shape: f32[8,128], index: 2, kind: output, shape index: {}]  }
   0x1   :  { %8 = vsyncpa [#allocation6], 0 }
   0x2   :  { %9 = vsyncpa [#allocation4], 0  ;;  %s15_s11 = sshll.u32 %s222_s0, 4  ;;  %s191_s12 = smov [#allocation2]   ;;  %s16_s11 = int_to_ptr.hbm [resolvable:$true] %s15_s11 }
   0x3   :  { %s17_s13 = sshll.u32 %s191_s12, 4  ;;  %s25_s16 = sshll.u32 %s223_s1, 4  ;;  %s18_s13 = int_to_ptr.vmem [resolvable:$true] %s17_s13  ;;  %s26_s16 = int_to_ptr.hbm [resolvable:$true] %s25_s16 }
   0x4   :  { %20 = dma.hbm_to_vmem [thread:$0]  %s16_s11, 128, %s18_s13, [#allocation3]  }
   0x5   :  { %s192_s17 = smov [#allocation5]   ;;  %s193_s19 = smov 128  }
   0x6   :  { %s27_s18 = sshll.u32 %s192_s17, 4  ;;  %s194_s20 = smov 8   ;;  %s28_s18 = int_to_ptr.vmem [resolvable:$true] %s27_s18 }
   0x7   :  { %33 = dma.hbm_to_vmem [thread:$0]  %s26_s16, 512, %s28_s18, [#allocation6], %s193_s19, %s193_s19, %s194_s20  }
   0x8   :  { %185 = dma.done.wait [#allocation3], 128  }
   0x9   :  { %186 = vsyncadd [#allocation3], 4294967168 }
   0xa   :  { %187 = dma.done.wait [#allocation6], 512  }
   0xb   :  { %188 = vsyncadd [#allocation6], 4294966784  ;;  %v42_v0 = vld [vmem:[#allocation2] sm:$0xff]  ;;  %vm44_vm0 = vcmask 261120   ;;  %v61_v4 = vld [vmem:[#allocation5 + $0x10] sm:$0xff]  ;;  %s195_s0 = smov [#allocation7]  }
   0xc   :  { %v43_v1 = vmul.f32 %v42_v0, %v42_v0  ;;  %v62_v3 = vld [vmem:[#allocation5 + $0x18] sm:$0xff]  ;;  %v60_v5 = vld [vmem:[#allocation5 + $0x8] sm:$0xff]  ;;  %v59_v6 = vld [vmem:[#allocation5] sm:$0xff]  ;;  %s92_s1 = sshll.u32 %s195_s0, 4  ;;  %s94_s23 = sshll.u32 %s224_s2, 4  ;;  %s93_s1 = int_to_ptr.vmem [resolvable:$true] %s92_s1  ;;  %s95_s23 = int_to_ptr.hbm [resolvable:$true] %s94_s23 }
   0xd   :  { %78 = vmatpush.msra.mxu0 %v62_v3 }
   0xe   :  { %v45_v2 = vsel %vm44_vm0, %v43_v1, 0.0 }
   0xf   :  { %46 = vadd.xlane.f32.xlu0 %v45_v2  ;;  %79 = vmatpush.msra.mxu0 %v61_v4 }
  0x11   :  { %80 = vmatpush.msra.mxu0 %v60_v5 }
  0x13   :  { %81 = vmatpush.msra.mxu0 %v59_v6 }
  0x82   :  { %v47_v7 = vpop.xlane.xlu0 %46 }
  0x83   :  { %111 = vrsqrt.f32 %v47_v7  ;;  %vm54_vm2 = vweird.f32 %v47_v7 }
  0x89   :  { %v112_v8 = vpop.eup %111 }
  0x8a   :  { %v49_v9 = vmul.f32 %v112_v8, %v47_v7  ;;  %vm55_vm1 = vweird.f32 %v112_v8 }
  0x8b   :  { %vm56_vm3 = vmor %vm54_vm2, %vm55_vm1 }
  0x8c   :  { %v50_v10 = vmul.f32 %v112_v8, %v49_v9 }
  0x8e   :  { %v51_v11 = vmul.f32 0.5, %v50_v10 }
  0x90   :  { %v52_v12 = vsub.f32 1.5, %v51_v11 }
  0x92   :  { %v53_v13 = vmul.f32 %v112_v8, %v52_v12 }
  0x94   :  { %v57_v14 = vsel %vm56_vm3, %v112_v8, %v53_v13 }
  0x95   :  { %v58_v15 = vmul.f32 %v57_v14, %v42_v0 }
  0x97   :  { %105 = vmatmul.msk.f32.vlgmr.msra.gmra.mxu0 %vm44_vm0, %v58_v15 }
 0x114   :  { %v83_v16 = vpop.f32.mrf.mxu0 }
 0x115   :  { %86 = vst [vmem:[#allocation7] sm:$0xff] %v83_v16 }
 0x116   :  { %97 = dma.vmem_to_hbm [thread:$0]  %s93_s1, 128, %s95_s23, [#allocation4]  }
 0x117   :  { %189 = dma.done.wait [#allocation4], 128  }
 0x118   :  { %190 = vsyncadd [#allocation4], 4294967168 }
 0x119   :  { %102 = vsyncpa [#allocation3], 1 }
 0x11a   :  { %103 = vsyncpa [#allocation6], 1 }
 0x11b   :  { %104 = vsyncpa [#allocation4], 1 }

</bundles_post_ra>
